<compile_context>
chip_gen: v5e
topology: v5e:2x2
jax: 0.10.0
libtpu: 0.0.40
codegen_flags: <defaults>
</compile_context>

<pallas_src>
import math

import jax
import jax.numpy as jnp
from jax.experimental import pallas as pl
from jax.experimental.pallas import tpu as pltpu


def _vmem_capacity_bytes() -> int:
    """Physical VMEM per TensorCore; conservative fallback if the query fails."""
    try:
        cap = int(getattr(pltpu.get_tpu_info(), "vmem_capacity_bytes", 0))
        if cap > 0:
            return cap
    except Exception:
        pass
    return 64 * 2**20  # v7x per-TensorCore VMEM (most restrictive generation)


def _vmem_need(tq, g, s, dq, dv, in_isz, out_isz, with_attn):
    """Estimated VMEM footprint of one pipelined grid step (bytes)."""
    f32 = 4
    need = 2 * g * tq * dq * in_isz          # q block (double-buffered)
    need += 2 * g * s * dq * in_isz          # K block (Mosaic still allocates 2 bufs)
    need += 2 * g * s * dv * in_isz          # V block
    need += 2 * tq * g * dv * out_isz        # score output block
    if with_attn:
        need += 2 * g * tq * s * out_isz     # attn output block
    need += 4 * tq * s * f32                 # qk / e / attn f32 + low-precision copy
    return need


def _plan_tiles(bh, s, dq, dv, in_isz, out_isz, budget, with_attn):
    """Pick (TQ, G): largest lane-dense head group, then largest query tile, that fits."""
    gmax = max(1, 128 // dv) if (dv < 128 and dq < 128) else 1
    g_cands = [g for g in range(min(gmax, bh), 0, -1) if bh % g == 0] or [1]

    tq_cands = []
    if s <= 512:
        tq_cands.append(s)
    for t in (512, 256, 128, 64):
        if t <= s and t not in tq_cands:
            tq_cands.append(t)
    if not tq_cands:
        tq_cands = [s]

    for g in g_cands:
        for tq in tq_cands:
            if _vmem_need(tq, g, s, dq, dv, in_isz, out_isz, with_attn) <= budget:
                return tq, g
    # TODO(synk): key-axis (two-pass online-softmax) tiling for very long S where
    # resident K/V no longer fits VMEM (mainly v7x at S >= ~8-16K); until then fall
    # back to the smallest query tile and a single head per step.
    return tq_cands[-1], 1


def _make_kernel(scale, g, dv, mm_dtype, with_attn):
    def kernel(q_ref, k_ref, v_ref, *out_refs):
        if with_attn:
            score_ref, attn_ref = out_refs
        else:
            (score_ref,) = out_refs

        pieces = []
        # Fully-unrolled static loop over the packed heads: static head index and
        # static lane offsets; one lane-dense (TQ, G*Dv) store at the end.
        for h in range(g):
            qh = (q_ref[0, h] * scale).astype(mm_dtype)   # (TQ, Dq), scale folded in
            kh = k_ref[0, h].astype(mm_dtype)             # (S, Dq)
            vh = v_ref[0, h].astype(mm_dtype)             # (S, Dv)

            # qk[i, j] = sum_d q[i, d] * k[j, d] — contraction on K's last dim,
            # no materialized transpose; f32 accumulation on the MXU.
            qk = jax.lax.dot_general(
                qh, kh,
                dimension_numbers=(((1,), (1,)), ((), ())),
                preferred_element_type=jnp.float32)       # (TQ, S) f32

            # Numerically stable softmax over the key axis, in f32.
            m = jnp.max(qk, axis=-1, keepdims=True)
            e = jnp.exp(qk - m)
            denom = jnp.sum(e, axis=-1, keepdims=True)
            attn = e * pl.reciprocal(denom, approx=True)  # (TQ, S) f32

            # Cast the big (TQ, S) tensor once; reuse for matmul and (if dtypes
            # match) the attn store.
            attn_mm = attn.astype(mm_dtype)
            score = jnp.dot(attn_mm, vh,
                            preferred_element_type=jnp.float32)  # (TQ, Dv) f32
            pieces.append(score.astype(score_ref.dtype))

            if with_attn:
                attn_ref[0, h] = (attn_mm if attn_ref.dtype == mm_dtype
                                  else attn.astype(attn_ref.dtype))

        score_ref[0] = pieces[0] if g == 1 else jnp.concatenate(pieces, axis=-1)

    return kernel


def dot_score(q, k, v, attn_mask, d_model, *, matmul_dtype=None, return_attn=True):
    """Pallas equivalent of DotScore.forward.

    q: [B, H, S, Dq], k: [B, H, S, Dq], v: [B, H, S, Dv], attn_mask: [B, H, S, S].
    Returns (score [B, H, S, Dv], attn [B, H, S, S]) when return_attn=True, else score.
    attn_mask is accepted but unused, matching the reference forward exactly.
    matmul_dtype: optional lower-precision MXU operand dtype (e.g. jnp.bfloat16 on
    v6e/v7x); accumulation stays f32.  Default: native input dtype (exact path).
    """
    del attn_mask  # TODO(synk): the reference forward never applies the mask.
    B, H, S, Dq = q.shape
    Dv = v.shape[-1]
    BH = B * H

    out_dtype = q.dtype
    mm_dtype = jnp.dtype(matmul_dtype) if matmul_dtype is not None else jnp.dtype(q.dtype)
    in_isz = jnp.dtype(q.dtype).itemsize
    out_isz = jnp.dtype(out_dtype).itemsize

    # Clamp the scoped-VMEM request to the chip's actual capacity (~85% headroom):
    # ~54 MiB on v7x, ~109 MiB on v5e/v6e.
    budget = int(_vmem_capacity_bytes() * 0.85)
    TQ, G = _plan_tiles(BH, S, Dq, Dv, in_isz, out_isz, budget, return_attn)
    NG = BH // G
    n_q = pl.cdiv(S, TQ)

    need = _vmem_need(TQ, G, S, Dq, Dv, in_isz, out_isz, return_attn)
    vmem_limit = int(min(budget, max(32 * 2**20, int(need * 1.25))))

    qf = q.reshape(NG, G, S, Dq)
    kf = k.reshape(NG, G, S, Dq)
    vf = v.reshape(NG, G, S, Dv)

    kernel = _make_kernel(1.0 / math.sqrt(float(d_model)), G, Dv, mm_dtype, return_attn)

    in_specs = [
        pl.BlockSpec((1, G, TQ, Dq), lambda i, j: (i, 0, j, 0)),
        # K / V stay resident in VMEM across the query-tile axis.
        pl.BlockSpec((1, G, S, Dq), lambda i, j: (i, 0, 0, 0)),
        pl.BlockSpec((1, G, S, Dv), lambda i, j: (i, 0, 0, 0)),
    ]
    score_shape = jax.ShapeDtypeStruct((NG, S, G * Dv), out_dtype)
    score_spec = pl.BlockSpec((1, TQ, G * Dv), lambda i, j: (i, j, 0))
    if return_attn:
        out_shape = (score_shape, jax.ShapeDtypeStruct((NG, G, S, S), out_dtype))
        out_specs = [score_spec,
                     pl.BlockSpec((1, G, TQ, S), lambda i, j: (i, 0, j, 0))]
    else:
        out_shape = score_shape
        out_specs = score_spec

    result = pl.pallas_call(
        kernel,
        out_shape=out_shape,
        grid_spec=pltpu.PrefetchScalarGridSpec(
            num_scalar_prefetch=0,
            grid=(NG, n_q),
            in_specs=in_specs,
            out_specs=out_specs,
        ),
        compiler_params=pltpu.CompilerParams(
            dimension_semantics=("parallel", "parallel"),
            vmem_limit_bytes=vmem_limit,
        ),
    )(qf, kf, vf)

    if return_attn:
        score_f, attn_f = result
    else:
        score_f = result

    # Un-pack the lane-dense (TQ, G*Dv) slab back to [B, H, S, Dv] (layout plumbing).
    score = score_f.reshape(NG, S, G, Dv).transpose(0, 2, 1, 3).reshape(B, H, S, Dv)
    if not return_attn:
        return score
    attn = attn_f.reshape(B, H, S, S)
    return score, attn


def _reference(q, k, v, d_model):
    qk = jnp.einsum("bhsd,bhtd->bhst", q, k) / math.sqrt(d_model)
    attn = jax.nn.softmax(qk, axis=-1)
    score = jnp.einsum("bhst,bhtd->bhsd", attn, v)
    return score, attn


if __name__ == "__main__":
    B, H, S, D = 2, 4, 8, 32
    d_model = D

    key = jax.random.PRNGKey(0)
    kq, kk, kv = jax.random.split(key, 3)
    q = jax.random.normal(kq, (B, H, S, D), dtype=jnp.float32)
    k = jax.random.normal(kk, (B, H, S, D), dtype=jnp.float32)
    v = jax.random.normal(kv, (B, H, S, D), dtype=jnp.float32)
    attn_mask = jnp.zeros((B, H, S, S), dtype=jnp.float32)

    score, attn = dot_score(q, k, v, attn_mask, d_model)
    score = jax.block_until_ready(score)
    attn = jax.block_until_ready(attn)

    score_ref, attn_ref = _reference(q, k, v, d_model)
    # approx reciprocal in the softmax denominator -> ~1e-4 relative error budget.
    assert jnp.allclose(score, score_ref, atol=2e-3, rtol=2e-3)
    assert jnp.allclose(attn, attn_ref, atol=2e-3, rtol=2e-3)

    # score-only fast path (skips the (S, S) attn writeback entirely).
    score_only = jax.block_until_ready(
        dot_score(q, k, v, attn_mask, d_model, return_attn=False))
    assert jnp.allclose(score_only, score_ref, atol=2e-3, rtol=2e-3)

    print("KERNEL_OK")
</pallas_src>

<mosaic_0001>
module attributes {stable_mosaic.version = 11 : i64} {
  func.func @kernel(%arg0: i32, %arg1: i32, %arg2: memref<1x4x8x32xf32, #tpu.memory_space<vmem>>, %arg3: memref<1x4x8x32xf32, #tpu.memory_space<vmem>>, %arg4: memref<1x4x8x32xf32, #tpu.memory_space<vmem>>, %arg5: memref<1x8x128xf32, #tpu.memory_space<vmem>>, %arg6: memref<1x4x8x8xf32, #tpu.memory_space<vmem>>) attributes {dimension_semantics = [#tpu.dimension_semantics<parallel>, #tpu.dimension_semantics<parallel>], iteration_bounds = array<i64: 2, 1>, scalar_prefetch = 0 : i64, scratch_operands = 0 : i64, tpu.core_type = #tpu.core_type<tc>, window_params = [{transform_indices = @transform_0, window_bounds = array<i64: 1, 4, 8, 32>}, {transform_indices = @transform_1, window_bounds = array<i64: 1, 4, 8, 32>}, {transform_indices = @transform_2, window_bounds = array<i64: 1, 4, 8, 32>}, {transform_indices = @transform_3, window_bounds = array<i64: 1, 8, 128>}, {transform_indices = @transform_4, window_bounds = array<i64: 1, 4, 8, 8>}]} {
    %c0 = arith.constant 0 : index
    %c0_0 = arith.constant 0 : index
    %c0_1 = arith.constant 0 : index
    %c0_2 = arith.constant 0 : index
    %0 = vector.load %arg2[%c0, %c0_0, %c0_1, %c0_2] : memref<1x4x8x32xf32, #tpu.memory_space<vmem>>, vector<1x1x8x32xf32>
    %1 = vector.shape_cast %0 : vector<1x1x8x32xf32> to vector<8x32xf32>
    %cst = arith.constant 0.176776692 : f32
    %2 = vector.broadcast %cst : f32 to vector<8x32xf32>
    %3 = arith.mulf %1, %2 : vector<8x32xf32>
    %c0_3 = arith.constant 0 : index
    %c0_4 = arith.constant 0 : index
    %c0_5 = arith.constant 0 : index
    %c0_6 = arith.constant 0 : index
    %4 = vector.load %arg3[%c0_3, %c0_4, %c0_5, %c0_6] : memref<1x4x8x32xf32, #tpu.memory_space<vmem>>, vector<1x1x8x32xf32>
    %5 = vector.shape_cast %4 : vector<1x1x8x32xf32> to vector<8x32xf32>
    %c0_7 = arith.constant 0 : index
    %c0_8 = arith.constant 0 : index
    %c0_9 = arith.constant 0 : index
    %c0_10 = arith.constant 0 : index
    %6 = vector.load %arg4[%c0_7, %c0_8, %c0_9, %c0_10] : memref<1x4x8x32xf32, #tpu.memory_space<vmem>>, vector<1x1x8x32xf32>
    %7 = vector.shape_cast %6 : vector<1x1x8x32xf32> to vector<8x32xf32>
    %cst_11 = arith.constant dense<0.000000e+00> : vector<8x8xf32>
    %8 = tpu.matmul %3, %5, %cst_11 {dimension_numbers = #tpu.dot_dimension_numbers<[1], [1], [0], [0], [0, 0, 1, 0], [], []>} : vector<8x32xf32>, vector<8x32xf32>, vector<8x8xf32> -> vector<8x8xf32>
    %cst_12 = arith.constant dense<0xFF800000> : vector<8xf32>
    %9 = vector.multi_reduction <maximumf>, %8, %cst_12 [1] : vector<8x8xf32> to vector<8xf32>
    %10 = vector.shape_cast %9 : vector<8xf32> to vector<8x1xf32>
    %11 = vector.broadcast %10 : vector<8x1xf32> to vector<8x8xf32>
    %12 = arith.subf %8, %11 : vector<8x8xf32>
    %13 = math.exp %12 : vector<8x8xf32>
    %cst_13 = arith.constant dense<0.000000e+00> : vector<8xf32>
    %14 = vector.multi_reduction <add>, %13, %cst_13 [1] : vector<8x8xf32> to vector<8xf32>
    %15 = vector.shape_cast %14 : vector<8xf32> to vector<8x1xf32>
    %16 = tpu.reciprocal %15 {approx = true} : vector<8x1xf32> -> vector<8x1xf32>
    %17 = vector.broadcast %16 : vector<8x1xf32> to vector<8x8xf32>
    %18 = arith.mulf %13, %17 : vector<8x8xf32>
    %cst_14 = arith.constant dense<0.000000e+00> : vector<8x32xf32>
    %19 = tpu.matmul %18, %7, %cst_14 {dimension_numbers = #tpu.dot_dimension_numbers<[1], [0], [0], [1], [0, 0, 1, 1], [], []>} : vector<8x8xf32>, vector<8x32xf32>, vector<8x32xf32> -> vector<8x32xf32>
    %c0_15 = arith.constant 0 : index
    %c0_16 = arith.constant 0 : index
    %c0_17 = arith.constant 0 : index
    %c0_18 = arith.constant 0 : index
    %20 = vector.load %arg6[%c0_15, %c0_16, %c0_17, %c0_18] : memref<1x4x8x8xf32, #tpu.memory_space<vmem>>, vector<1x1x8x8xf32>
    %21 = vector.shape_cast %20 : vector<1x1x8x8xf32> to vector<8x8xf32>
    %22 = vector.shape_cast %18 : vector<8x8xf32> to vector<1x1x8x8xf32>
    tpu.vector_store %arg6[%c0_15, %c0_16, %c0_17, %c0_18], %22 {strides = array<i32>} : memref<1x4x8x8xf32, #tpu.memory_space<vmem>>, vector<1x1x8x8xf32>,
    %c0_19 = arith.constant 0 : index
    %c1 = arith.constant 1 : index
    %c0_20 = arith.constant 0 : index
    %c0_21 = arith.constant 0 : index
    %23 = vector.load %arg2[%c0_19, %c1, %c0_20, %c0_21] : memref<1x4x8x32xf32, #tpu.memory_space<vmem>>, vector<1x1x8x32xf32>
    %24 = vector.shape_cast %23 : vector<1x1x8x32xf32> to vector<8x32xf32>
    %cst_22 = arith.constant 0.176776692 : f32
    %25 = vector.broadcast %cst_22 : f32 to vector<8x32xf32>
    %26 = arith.mulf %24, %25 : vector<8x32xf32>
    %c0_23 = arith.constant 0 : index
    %c1_24 = arith.constant 1 : index
    %c0_25 = arith.constant 0 : index
    %c0_26 = arith.constant 0 : index
    %27 = vector.load %arg3[%c0_23, %c1_24, %c0_25, %c0_26] : memref<1x4x8x32xf32, #tpu.memory_space<vmem>>, vector<1x1x8x32xf32>
    %28 = vector.shape_cast %27 : vector<1x1x8x32xf32> to vector<8x32xf32>
    %c0_27 = arith.constant 0 : index
    %c1_28 = arith.constant 1 : index
    %c0_29 = arith.constant 0 : index
    %c0_30 = arith.constant 0 : index
    %29 = vector.load %arg4[%c0_27, %c1_28, %c0_29, %c0_30] : memref<1x4x8x32xf32, #tpu.memory_space<vmem>>, vector<1x1x8x32xf32>
    %30 = vector.shape_cast %29 : vector<1x1x8x32xf32> to vector<8x32xf32>
    %cst_31 = arith.constant dense<0.000000e+00> : vector<8x8xf32>
    %31 = tpu.matmul %26, %28, %cst_31 {dimension_numbers = #tpu.dot_dimension_numbers<[1], [1], [0], [0], [0, 0, 1, 0], [], []>} : vector<8x32xf32>, vector<8x32xf32>, vector<8x8xf32> -> vector<8x8xf32>
    %cst_32 = arith.constant dense<0xFF800000> : vector<8xf32>
    %32 = vector.multi_reduction <maximumf>, %31, %cst_32 [1] : vector<8x8xf32> to vector<8xf32>
    %33 = vector.shape_cast %32 : vector<8xf32> to vector<8x1xf32>
    %34 = vector.broadcast %33 : vector<8x1xf32> to vector<8x8xf32>
    %35 = arith.subf %31, %34 : vector<8x8xf32>
    %36 = math.exp %35 : vector<8x8xf32>
    %cst_33 = arith.constant dense<0.000000e+00> : vector<8xf32>
    %37 = vector.multi_reduction <add>, %36, %cst_33 [1] : vector<8x8xf32> to vector<8xf32>
    %38 = vector.shape_cast %37 : vector<8xf32> to vector<8x1xf32>
    %39 = tpu.reciprocal %38 {approx = true} : vector<8x1xf32> -> vector<8x1xf32>
    %40 = vector.broadcast %39 : vector<8x1xf32> to vector<8x8xf32>
    %41 = arith.mulf %36, %40 : vector<8x8xf32>
    %cst_34 = arith.constant dense<0.000000e+00> : vector<8x32xf32>
    %42 = tpu.matmul %41, %30, %cst_34 {dimension_numbers = #tpu.dot_dimension_numbers<[1], [0], [0], [1], [0, 0, 1, 1], [], []>} : vector<8x8xf32>, vector<8x32xf32>, vector<8x32xf32> -> vector<8x32xf32>
    %c0_35 = arith.constant 0 : index
    %c1_36 = arith.constant 1 : index
    %c0_37 = arith.constant 0 : index
    %c0_38 = arith.constant 0 : index
    %43 = vector.load %arg6[%c0_35, %c1_36, %c0_37, %c0_38] : memref<1x4x8x8xf32, #tpu.memory_space<vmem>>, vector<1x1x8x8xf32>
    %44 = vector.shape_cast %43 : vector<1x1x8x8xf32> to vector<8x8xf32>
    %45 = vector.shape_cast %41 : vector<8x8xf32> to vector<1x1x8x8xf32>
    tpu.vector_store %arg6[%c0_35, %c1_36, %c0_37, %c0_38], %45 {strides = array<i32>} : memref<1x4x8x8xf32, #tpu.memory_space<vmem>>, vector<1x1x8x8xf32>,
    %c0_39 = arith.constant 0 : index
    %c2 = arith.constant 2 : index
    %c0_40 = arith.constant 0 : index
    %c0_41 = arith.constant 0 : index
    %46 = vector.load %arg2[%c0_39, %c2, %c0_40, %c0_41] : memref<1x4x8x32xf32, #tpu.memory_space<vmem>>, vector<1x1x8x32xf32>
    %47 = vector.shape_cast %46 : vector<1x1x8x32xf32> to vector<8x32xf32>
    %cst_42 = arith.constant 0.176776692 : f32
    %48 = vector.broadcast %cst_42 : f32 to vector<8x32xf32>
    %49 = arith.mulf %47, %48 : vector<8x32xf32>
    %c0_43 = arith.constant 0 : index
    %c2_44 = arith.constant 2 : index
    %c0_45 = arith.constant 0 : index
    %c0_46 = arith.constant 0 : index
    %50 = vector.load %arg3[%c0_43, %c2_44, %c0_45, %c0_46] : memref<1x4x8x32xf32, #tpu.memory_space<vmem>>, vector<1x1x8x32xf32>
    %51 = vector.shape_cast %50 : vector<1x1x8x32xf32> to vector<8x32xf32>
    %c0_47 = arith.constant 0 : index
    %c2_48 = arith.constant 2 : index
    %c0_49 = arith.constant 0 : index
    %c0_50 = arith.constant 0 : index
    %52 = vector.load %arg4[%c0_47, %c2_48, %c0_49, %c0_50] : memref<1x4x8x32xf32, #tpu.memory_space<vmem>>, vector<1x1x8x32xf32>
    %53 = vector.shape_cast %52 : vector<1x1x8x32xf32> to vector<8x32xf32>
    %cst_51 = arith.constant dense<0.000000e+00> : vector<8x8xf32>
    %54 = tpu.matmul %49, %51, %cst_51 {dimension_numbers = #tpu.dot_dimension_numbers<[1], [1], [0], [0], [0, 0, 1, 0], [], []>} : vector<8x32xf32>, vector<8x32xf32>, vector<8x8xf32> -> vector<8x8xf32>
    %cst_52 = arith.constant dense<0xFF800000> : vector<8xf32>
    %55 = vector.multi_reduction <maximumf>, %54, %cst_52 [1] : vector<8x8xf32> to vector<8xf32>
    %56 = vector.shape_cast %55 : vector<8xf32> to vector<8x1xf32>
    %57 = vector.broadcast %56 : vector<8x1xf32> to vector<8x8xf32>
    %58 = arith.subf %54, %57 : vector<8x8xf32>
    %59 = math.exp %58 : vector<8x8xf32>
    %cst_53 = arith.constant dense<0.000000e+00> : vector<8xf32>
    %60 = vector.multi_reduction <add>, %59, %cst_53 [1] : vector<8x8xf32> to vector<8xf32>
    %61 = vector.shape_cast %60 : vector<8xf32> to vector<8x1xf32>
    %62 = tpu.reciprocal %61 {approx = true} : vector<8x1xf32> -> vector<8x1xf32>
    %63 = vector.broadcast %62 : vector<8x1xf32> to vector<8x8xf32>
    %64 = arith.mulf %59, %63 : vector<8x8xf32>
    %cst_54 = arith.constant dense<0.000000e+00> : vector<8x32xf32>
    %65 = tpu.matmul %64, %53, %cst_54 {dimension_numbers = #tpu.dot_dimension_numbers<[1], [0], [0], [1], [0, 0, 1, 1], [], []>} : vector<8x8xf32>, vector<8x32xf32>, vector<8x32xf32> -> vector<8x32xf32>
    %c0_55 = arith.constant 0 : index
    %c2_56 = arith.constant 2 : index
    %c0_57 = arith.constant 0 : index
    %c0_58 = arith.constant 0 : index
    %66 = vector.load %arg6[%c0_55, %c2_56, %c0_57, %c0_58] : memref<1x4x8x8xf32, #tpu.memory_space<vmem>>, vector<1x1x8x8xf32>
    %67 = vector.shape_cast %66 : vector<1x1x8x8xf32> to vector<8x8xf32>
    %68 = vector.shape_cast %64 : vector<8x8xf32> to vector<1x1x8x8xf32>
    tpu.vector_store %arg6[%c0_55, %c2_56, %c0_57, %c0_58], %68 {strides = array<i32>} : memref<1x4x8x8xf32, #tpu.memory_space<vmem>>, vector<1x1x8x8xf32>,
    %c0_59 = arith.constant 0 : index
    %c3 = arith.constant 3 : index
    %c0_60 = arith.constant 0 : index
    %c0_61 = arith.constant 0 : index
    %69 = vector.load %arg2[%c0_59, %c3, %c0_60, %c0_61] : memref<1x4x8x32xf32, #tpu.memory_space<vmem>>, vector<1x1x8x32xf32>
    %70 = vector.shape_cast %69 : vector<1x1x8x32xf32> to vector<8x32xf32>
    %cst_62 = arith.constant 0.176776692 : f32
    %71 = vector.broadcast %cst_62 : f32 to vector<8x32xf32>
    %72 = arith.mulf %70, %71 : vector<8x32xf32>
    %c0_63 = arith.constant 0 : index
    %c3_64 = arith.constant 3 : index
    %c0_65 = arith.constant 0 : index
    %c0_66 = arith.constant 0 : index
    %73 = vector.load %arg3[%c0_63, %c3_64, %c0_65, %c0_66] : memref<1x4x8x32xf32, #tpu.memory_space<vmem>>, vector<1x1x8x32xf32>
    %74 = vector.shape_cast %73 : vector<1x1x8x32xf32> to vector<8x32xf32>
    %c0_67 = arith.constant 0 : index
    %c3_68 = arith.constant 3 : index
    %c0_69 = arith.constant 0 : index
    %c0_70 = arith.constant 0 : index
    %75 = vector.load %arg4[%c0_67, %c3_68, %c0_69, %c0_70] : memref<1x4x8x32xf32, #tpu.memory_space<vmem>>, vector<1x1x8x32xf32>
    %76 = vector.shape_cast %75 : vector<1x1x8x32xf32> to vector<8x32xf32>
    %cst_71 = arith.constant dense<0.000000e+00> : vector<8x8xf32>
    %77 = tpu.matmul %72, %74, %cst_71 {dimension_numbers = #tpu.dot_dimension_numbers<[1], [1], [0], [0], [0, 0, 1, 0], [], []>} : vector<8x32xf32>, vector<8x32xf32>, vector<8x8xf32> -> vector<8x8xf32>
    %cst_72 = arith.constant dense<0xFF800000> : vector<8xf32>
    %78 = vector.multi_reduction <maximumf>, %77, %cst_72 [1] : vector<8x8xf32> to vector<8xf32>
    %79 = vector.shape_cast %78 : vector<8xf32> to vector<8x1xf32>
    %80 = vector.broadcast %79 : vector<8x1xf32> to vector<8x8xf32>
    %81 = arith.subf %77, %80 : vector<8x8xf32>
    %82 = math.exp %81 : vector<8x8xf32>
    %cst_73 = arith.constant dense<0.000000e+00> : vector<8xf32>
    %83 = vector.multi_reduction <add>, %82, %cst_73 [1] : vector<8x8xf32> to vector<8xf32>
    %84 = vector.shape_cast %83 : vector<8xf32> to vector<8x1xf32>
    %85 = tpu.reciprocal %84 {approx = true} : vector<8x1xf32> -> vector<8x1xf32>
    %86 = vector.broadcast %85 : vector<8x1xf32> to vector<8x8xf32>
    %87 = arith.mulf %82, %86 : vector<8x8xf32>
    %cst_74 = arith.constant dense<0.000000e+00> : vector<8x32xf32>
    %88 = tpu.matmul %87, %76, %cst_74 {dimension_numbers = #tpu.dot_dimension_numbers<[1], [0], [0], [1], [0, 0, 1, 1], [], []>} : vector<8x8xf32>, vector<8x32xf32>, vector<8x32xf32> -> vector<8x32xf32>
    %c0_75 = arith.constant 0 : index
    %c3_76 = arith.constant 3 : index
    %c0_77 = arith.constant 0 : index
    %c0_78 = arith.constant 0 : index
    %89 = vector.load %arg6[%c0_75, %c3_76, %c0_77, %c0_78] : memref<1x4x8x8xf32, #tpu.memory_space<vmem>>, vector<1x1x8x8xf32>
    %90 = vector.shape_cast %89 : vector<1x1x8x8xf32> to vector<8x8xf32>
    %91 = vector.shape_cast %87 : vector<8x8xf32> to vector<1x1x8x8xf32>
    tpu.vector_store %arg6[%c0_75, %c3_76, %c0_77, %c0_78], %91 {strides = array<i32>} : memref<1x4x8x8xf32, #tpu.memory_space<vmem>>, vector<1x1x8x8xf32>,
    %92 = tpu.concatenate %19, %42, %65, %88 in 1 : vector<8x32xf32>, vector<8x32xf32>, vector<8x32xf32>, vector<8x32xf32> -> vector<8x128xf32>
    %c0_79 = arith.constant 0 : index
    %c0_80 = arith.constant 0 : index
    %c0_81 = arith.constant 0 : index
    %93 = vector.load %arg5[%c0_79, %c0_80, %c0_81] : memref<1x8x128xf32, #tpu.memory_space<vmem>>, vector<1x8x128xf32>
    %94 = vector.shape_cast %93 : vector<1x8x128xf32> to vector<8x128xf32>
    %95 = vector.shape_cast %92 : vector<8x128xf32> to vector<1x8x128xf32>
    tpu.vector_store %arg5[%c0_79, %c0_80, %c0_81], %95 {strides = array<i32>} : memref<1x8x128xf32, #tpu.memory_space<vmem>>, vector<1x8x128xf32>,
    return
  }
  func.func @transform_0(%arg0: i32, %arg1: i32) -> (i32, i32, i32, i32) {
    %c0_i32 = arith.constant 0 : i32
    %c0_i32_0 = arith.constant 0 : i32
    %c0_i32_1 = arith.constant 0 : i32
    return %arg0, %c0_i32, %arg1, %c0_i32_0 : i32, i32, i32, i32
  }
  func.func @transform_1(%arg0: i32, %arg1: i32) -> (i32, i32, i32, i32) {
    %c0_i32 = arith.constant 0 : i32
    %c0_i32_0 = arith.constant 0 : i32
    %c0_i32_1 = arith.constant 0 : i32
    %c0_i32_2 = arith.constant 0 : i32
    return %arg0, %c0_i32, %c0_i32_0, %c0_i32_1 : i32, i32, i32, i32
  }
  func.func @transform_2(%arg0: i32, %arg1: i32) -> (i32, i32, i32, i32) {
    %c0_i32 = arith.constant 0 : i32
    %c0_i32_0 = arith.constant 0 : i32
    %c0_i32_1 = arith.constant 0 : i32
    %c0_i32_2 = arith.constant 0 : i32
    return %arg0, %c0_i32, %c0_i32_0, %c0_i32_1 : i32, i32, i32, i32
  }
  func.func @transform_3(%arg0: i32, %arg1: i32) -> (i32, i32, i32) {
    %c0_i32 = arith.constant 0 : i32
    %c0_i32_0 = arith.constant 0 : i32
    return %arg0, %arg1, %c0_i32 : i32, i32, i32
  }
  func.func @transform_4(%arg0: i32, %arg1: i32) -> (i32, i32, i32, i32) {
    %c0_i32 = arith.constant 0 : i32
    %c0_i32_0 = arith.constant 0 : i32
    %c0_i32_1 = arith.constant 0 : i32
    return %arg0, %c0_i32, %arg1, %c0_i32_0 : i32, i32, i32, i32
  }
}

</mosaic_0001>

<bundles_post_ra>
// kernel: tpu_custom_call.1
= control target key start
LH: loop header
LB: loop body
LE: loop exit
PB: predicated region body
PF: predicated region fallthrough
CT: control target
= control target key end

     0   :  { %s1448_s0 = inlined_call_operand.hbm [shape: f32[2,4,8,32], index: 0, kind: input, shape index: {}]   ;;  %s1449_s1 = inlined_call_operand.hbm [shape: f32[2,4,8,32], index: 1, kind: input, shape index: {}]   ;;  %s1450_s2 = inlined_call_operand.hbm [shape: f32[2,4,8,32], index: 2, kind: input, shape index: {}]   ;;  %s1451_s3 = inlined_call_operand.hbm [shape: f32[2,8,128], index: 3, kind: output, shape index: {0}]   ;;  %s1452_s4 = inlined_call_operand.hbm [shape: f32[2,4,8,8], index: 4, kind: output, shape index: {1}]  }
   0x1   :  { %1459 = sst [smem:[#allocation21_spill]] %s1449_s1 }
   0x2   :  { %10 = vsyncpa [#allocation3], 0 }
   0x3   :  { %12 = vsyncpa [#allocation3 + $0x1], 0 }
   0x4   :  { %13 = vsyncpa [#allocation6], 0 }
   0x5   :  { %15 = vsyncpa [#allocation6 + $0x1], 0 }
   0x6   :  { %16 = vsyncpa [#allocation4], 0 }
   0x7   :  { %18 = vsyncpa [#allocation4 + $0x1], 0 }
   0x8   :  { %19 = vsyncpa [#allocation10], 0 }
   0x9   :  { %21 = vsyncpa [#allocation10 + $0x1], 0  ;;  %s1216_s15 = smov 0   ;;  %s1218_s16 = smov 0  }
   0xa   :  { %s1220_s17 = smov 0   ;;  %s1222_s18 = smov 0  }
   0xb   :  { %s1224_s19 = smov 0   ;;  %s1226_s20 = smov 0  }
   0xc LB: > { %1460 = sst [smem:[#allocation15_spill]] %s1170_s17  ;;  %s1247_s21 = sadd.s32 4294967295, %s1182_s20   ;;  %s1182_s20 = sphi %s1226_s20, %s27_s20   ;;  %s1178_s19 = sphi %s1224_s19, %s1478_s19   ;;  %s1174_s18 = sphi %s1222_s18, %s1477_s18   ;;  %s1170_s17 = sphi %s1220_s17, %s1476_s17   ;;  %s1166_s16 = sphi %s1218_s16, %s1480_s16   ;;  %s1162_s15 = sphi %s1216_s15, %s1479_s15  }
   0xd   : > { %1461 = sst [smem:[#allocation16_spill]] %s1178_s19  ;;  %s821_s22 = sadd.s32 4294967294, %s1182_s20  }
   0xe   : > { %1462 = sst [smem:[#allocation17_spill]] %s1182_s20  ;;  %s39_s23 = sadd.s32 1, %s1178_s19 }
   0xf   : > { %s48_s24 = sadd.s32 1, %s1170_s17  ;;  %p41_p0 = scmp.ge.s32.totalorder %s39_s23, 2 }
  0x10   : > { %p55_p1 = scmp.ne.s32.totalorder %s1170_s17, %s1166_s16  ;;  %p56_p2 = scmp.eq.s32.totalorder %s1182_s20, 0 }
  0x11   : > { %p61_p3 = scmp.ne.s32.totalorder %s1166_s16, %s1162_s15  ;;  %s1482_s23 = smov (%p41_p0, %s39_s23), 0 }
  0x12   : > { %1463 = sst [smem:[#allocation18_spill]] %s1482_s23  ;;  %p1259_p4 = por %p56_p2, %p55_p1 }
  0x13   : > { %p62_p5 = scmp.eq.s32.totalorder %s1247_s21, 0  ;;  %s43_s26 = ssub.s32 %s1178_s19, %s1482_s23 }
  0x14   : > { %p139_p6 = scmp.eq.s32.totalorder %s1247_s21, 1  ;;  %p46_p7 = scmp.eq.s32.totalorder %s43_s26, 0 }
  0x15   : > { %p1267_p8 = por %p62_p5, %p61_p3  ;;  %p145_p10 = scmp.eq.s32.totalorder %s821_s22, 1 }
  0x16   : > { %p1271_p9 = por %p139_p6, %p55_p1  ;;  %p823_p12 = scmp.ge.s32.totalorder %s1182_s20, 2 }
  0x17   : > { %s1276_s29 = scalar_select %p46_p7, %s1170_s17, %s48_s24  }
  0x18   : > { %p1278_p11 = por %p145_p10, %p61_p3  ;;  %p901_p13 = scmp.lt.s32.totalorder %s1182_s20, 2 }
  0x19   : > { %1467 = sst [smem:[#allocation19_spill]] %s1276_s29  ;;  %s193_s5 = sand.u32 1, %s1170_s17  }
  0x1a   : > { %s1468_s30 = scalar_select %p1278_p11, 1, 0 }
  0x1b   : > { %s1285_s6 = sshll.u32 %s193_s5, 5  ;;  %s870_s7 = sshll.u32 %s1178_s19, 5 }
  0x1c   : > { %1469 = sst [smem:[#allocation20_spill]] %s1468_s30  ;;  %p1290_p0 = pnand %p901_p13, %p1259_p4 }
  0x1d   : > { %s216_s9 = sand.u32 1, %s1182_s20   ;;  %s1471_s1 = sld [smem:[#allocation21_spill]] }
  0x1e   : > { %s220_s14 = scalar_lea.vmem [#allocation5], %s1285_s6  ;;  %s217_s24 = scalar_lea.sflag [#allocation6], %s216_s9 }
  0x1f   : > { %s228_s22 = sshll.u32 %s220_s14, 4  ;;  %s1184_s26 = smov 128   ;;  %s229_s22 = int_to_ptr.vmem [resolvable:$true] %s228_s22 }
  0x20   : > { %s1185_s25 = smov 8   ;;  %p833_p1 = scmp.ge.s32.totalorder %s1182_s20, 1 }
  0x21   : > { %p258_p2 = scmp.lt.s32.totalorder %s1182_s20, 3  ;;  %s194_s9 = scalar_lea.sflag [#allocation3], %s193_s5 }
  0x22   : > { %s247_s29 = scalar_lea.hbm %s1450_s2, %s870_s7  ;;  %s242_s20 = scalar_lea.vmem [#allocation7], %s1285_s6 }
  0x23   : > { %s225_s12 = scalar_lea.hbm %s1471_s1, %s870_s7  ;;  %p1303_p3 = pnand %p833_p1, %p258_p2 }
  0x24   : > { %s226_s13 = sshll.u32 %s225_s12, 4  ;;  %s203_s12 = scalar_lea.hbm %s1448_s0, %s870_s7  ;;  %s227_s13 = int_to_ptr.hbm [resolvable:$true] %s226_s13 }
  0x25   : > { %890 = dma.hbm_to_vmem [thread:$0]  (!%p1290_p0), %s227_s13, 512, %s229_s22, %s217_s24, %s1184_s26, %s1184_s26, %s1185_s25  }
  0x26   : > { %s204_s14 = sshll.u32 %s203_s12, 4  ;;  %s197_s1 = scalar_lea.vmem [#allocation2], %s1285_s6  ;;  %s205_s14 = int_to_ptr.hbm [resolvable:$true] %s204_s14 }
  0x27   : > { %s206_s19 = sshll.u32 %s197_s1, 4  ;;  %s248_s17 = sshll.u32 %s247_s29, 4  ;;  %s207_s19 = int_to_ptr.vmem [resolvable:$true] %s206_s19  ;;  %s249_s17 = int_to_ptr.hbm [resolvable:$true] %s248_s17 }
  0x28   : > { %887 = dma.hbm_to_vmem [thread:$0]  (!%p1290_p0), %s205_s14, 512, %s207_s19, %s194_s9, %s1184_s26, %s1184_s26, %s1185_s25  }
  0x29   : > { %s250_s30 = sshll.u32 %s242_s20, 4  ;;  %262 = sbr.rel (%p1303_p3) target bundleno = 1074 (0x432), region = 32  ;;  %s251_s30 = int_to_ptr.vmem [resolvable:$true] %s250_s30 }
  0x2a   : > { %893 = dma.hbm_to_vmem [thread:$0]  (!%p1290_p0), %s249_s17, 512, %s251_s30, %s217_s24, %s1184_s26, %s1184_s26, %s1185_s25  }
  0x2b   : > { %s1322_s1 = sand.u32 (!%p1303_p3), 1, %s1166_s16  }
  0x2c   : > { %s1325_s19 = sshll.u32 (!%p1303_p3), %s1322_s1, 5  ;;  %s265_s5 = scalar_lea.sflag (!%p1303_p3), [#allocation3], %s1322_s1 }
  0x2d   : > { %s1329_s29 = scalar_lea.vmem (!%p1303_p3), [#allocation2], %s1325_s19 }
  0x2e   : > { %1145 = dma.done.wait (%p1267_p8), %s265_s5, 512  }
  0x2f   : > { %1147 = vsyncadd (%p1267_p8), %s265_s5, 4294966784  ;;  %s274_s17 = sand.u32 1, %s1247_s21   ;;  %s1337_s23 = scalar_lea.vmem [#allocation5], %s1325_s19 }
  0x30   : > { %s275_s20 = scalar_lea.sflag [#allocation6], %s274_s17 }
  0x31   : > { %1149 = dma.done.wait (%p1267_p8), %s275_s20, 1024  }
  0x32   : > { %1151 = vsyncadd (%p1267_p8), %s275_s20, 4294966272  ;;  %vm333_vm0 = vcmask 261120   ;;  %v331_v0 = vld [vmem:[%s1337_s23] sm:$0xff]  ;;  %v843_v1 = vld [vmem:[%s1337_s23 + $0x8] sm:$0xff]  ;;  %vm360_vm1 = vcmask 64512   ;;  %s1361_s21 = scalar_lea.vmem [#allocation7], %s1325_s19 }
  0x33   : > { %v329_v2 = vld [vmem:[%s1329_s29] sm:$0xff]  ;;  %839 = vmatpush.xpose.msk.msra.mxu0 %vm333_vm0, %v331_v0  ;;  %845 = vmatpush.xpose.msk.msra.mxu2 %vm333_vm0, %v843_v1  ;;  %v842_v4 = vld [vmem:[%s1329_s29 + $0x8] sm:$0xff]  ;;  %v857_v5 = vld [vmem:[%s1337_s23 + $0x18] sm:$0xff]  ;;  %s1369_s27 = scalar_lea.vmem [#allocation9], %s1325_s19  ;;  %s1186_s30 = smov 32  }
  0x34   : > { %v330_v3 = vmul.f32 0.17677669, %v329_v2  ;;  %v398_v6 = vmul.f32 0.17677669, %v842_v4  ;;  %v856_v7 = vld [vmem:[%s1329_s29 + $0x18] sm:$0xff]  ;;  %v332_v25 = vld [vmem:[%s1361_s21] sm:$0xff] }
  0x35   : > { %v536_v8 = vmul.f32 0.17677669, %v856_v7  ;;  %390 = vmatpush.msra.mxu1 %v332_v25  ;;  %v850_v26 = vld [vmem:[%s1337_s23 + $0x10] sm:$0xff]  ;;  %v844_v27 = vld [vmem:[%s1361_s21 + $0x8] sm:$0xff]  ;;  %v858_v45 = vld [vmem:[%s1361_s21 + $0x18] sm:$0xff]  ;;  %s1187_s6 = smov 96  }
  0x36   : > { %840 = vmatmul.msk.f32.vlgmr.msra.gmra.mxu0 %vm333_vm0, %v330_v3  ;;  %846 = vmatmul.msk.f32.vlgmr.msra.gmra.mxu2 %vm333_vm0, %v398_v6  ;;  %v849_v33 = vld [vmem:[%s1329_s29 + $0x10] sm:$0xff]  ;;  %s655_s7 = sshll.u32 %s1369_s27, 4  ;;  %s873_s8 = sshll.u32 %s1174_s18, 5  ;;  %s656_s7 = int_to_ptr.vmem [resolvable:$true] %s655_s7 }
  0x37   : > { %859 = vmatpush.xpose.msk.msrb.mxu0 %vm333_vm0, %v857_v5  ;;  %852 = vmatpush.xpose.msk.msrb.mxu1 %vm333_vm0, %v850_v26  ;;  %v467_v36 = vmul.f32 0.17677669, %v849_v33  ;;  %v851_v54 = vld [vmem:[%s1361_s21 + $0x10] sm:$0xff]  ;;  %s654_s25 = scalar_lea.hbm %s1452_s4, %s873_s8  ;;  %s627_s11 = scalar_lea.sflag [#allocation10], %s1322_s1 }
  0x38   : > { %458 = vmatpush.msra.mxu3 %v844_v27  ;;  %596 = vmatpush.msrb.mxu2 %v858_v45  ;;  %s657_s10 = sshll.u32 %s654_s25, 4  ;;  %s1084_s22 = scalar_lea.hbm %s1452_s4, 64  ;;  %s658_s10 = int_to_ptr.hbm [resolvable:$true] %s657_s10 }
  0x39   : > { %s1078_s12 = sshra.s32 %s658_s10, 4  ;;  %s1079_s12 = int_to_ptr.hbm [resolvable:$true] %s1078_s12 }
  0x3a   : > { %527 = vmatpush.msrb.mxu3 %v851_v54  ;;  %s1080_s14 = scalar_lea.hbm %s1079_s12, 32  ;;  %p1085_p7 = scmp.lt.s32.totalorder %s1079_s12, %s1452_s4 }
  0x3b   : > { %p1081_p4 = scmp.ne.s32.totalorder %s1079_s12, %s1080_s14  ;;  %p1086_p8 = scmp.lt.s32.totalorder %s1084_s22, %s1080_s14 }
  0x3d   : > { %p1082_p5 = pnand %p1081_p4, %p1271_p9  ;;  %p1087_p10 = por %p1086_p8, %p1085_p7 }
  0x3e   : > { %860 = vmatmul.msk.f32.vlgmr.msrb.gmra.mxu0 %vm333_vm0, %v536_v8 }
  0x3f   : > { %p1083_p6 = pneg %p1082_p5 }
  0x41   : > { %p1088_p13 = pnand %p1087_p10, %p1083_p6 }
  0xb3   : > { %v357_v9 = vpop.f32.mrf.mxu0 }
  0xb4   : > { %v361_v10 = vsel %vm360_vm1, %v357_v9, -inf }
  0xb5   : > { %362 = vmax.xlane.f32.xlu0 %v361_v10 }
  0xb9   : > { %v426_v11 = vpop.f32.mrf.mxu2 }
  0xba   : > { %v429_v12 = vsel %vm360_vm1, %v426_v11, -inf }
  0xbb   : > { %430 = vmax.xlane.f32.xlu1 %v429_v12  ;;  %v564_v13 = vpop.f32.mrf.mxu0 }
  0xbc   : > { %v567_v14 = vsel %vm360_vm1, %v564_v13, -inf }
  0xbd   : > { %568 = vmax.xlane.f32.xlu2 %v567_v14 }
 0x128   : > { %v363_v15 = vpop.xlane.xlu0 %362 }
 0x129   : > { %v364_v16 = vsub.f32 %v357_v9, %v363_v15 }
 0x12b   : > { %v365_v17 = vmul.f32 1.442695, %v364_v16 }
 0x12d   : > { %958 = vpow2.f32 %v365_v17 }
 0x12e   : > { %v431_v18 = vpop.xlane.xlu1 %430 }
 0x12f   : > { %v432_v19 = vsub.f32 %v426_v11, %v431_v18 }
 0x130   : > { %v569_v28 = vpop.xlane.xlu2 %568 }
 0x131   : > { %v433_v20 = vmul.f32 1.442695, %v432_v19  ;;  %v570_v37 = vsub.f32 %v564_v13, %v569_v28 }
 0x133   : > { %v959_v21 = vpop.eup %958  ;;  %960 = vpow2.f32 %v433_v20  ;;  %v571_v39 = vmul.f32 1.442695, %v570_v37 }
 0x134   : > { %v367_v22 = vsel %vm360_vm1, %v959_v21, 0.0 }
 0x135   : > { %368 = vadd.xlane.f32.xlu0 %v367_v22 }
 0x139   : > { %v961_v23 = vpop.eup %960 }
 0x13a   : > { %v435_v24 = vsel %vm360_vm1, %v961_v23, 0.0 }
 0x13b   : > { %436 = vadd.xlane.f32.xlu2 %v435_v24 }
 0x1a8   : > { %v369_v29 = vpop.xlane.xlu0 %368 }
 0x1a9   : > { %962 = vrcp.f32 %v369_v29 }
 0x1ae   : > { %v437_v30 = vpop.xlane.xlu2 %436 }
 0x1af   : > { %v963_v31 = vpop.eup %962  ;;  %964 = vrcp.f32 %v437_v30 }
 0x1b0   : > { %v371_v32 = vmul.f32 %v963_v31, %v959_v21  ;;  %966 = vpow2.f32 %v571_v39 }
 0x1b2   : > { %841 = vmatmul.msk.f32.vlgmr.msra.gmra.mxu1 %vm360_vm1, %v371_v32  ;;  %395 = vst.msk [vmem:[%s1369_s27] sm:$0xff] %vm360_vm1, %v371_v32 }
 0x1b5   : > { %v965_v34 = vpop.eup %964 }
 0x1b6   : > { %v439_v35 = vmul.f32 %v965_v34, %v961_v23  ;;  %v967_v42 = vpop.eup %966 }
 0x1b7   : > { %v573_v44 = vsel %vm360_vm1, %v967_v42, 0.0 }
 0x1b8   : > { %847 = vmatmul.msk.f32.vlgmr.msra.gmra.mxu3 %vm360_vm1, %v439_v35  ;;  %848 = vst.msk [vmem:[%s1369_s27 + $0x8] sm:$0xff] %vm360_vm1, %v439_v35 }
 0x1ba   : > { %853 = vmatmul.msk.f32.vlgmr.msrb.gmra.mxu1 %vm333_vm0, %v467_v36 }
 0x22f   : > { %v1378_v38 = vpop.f32.mrf.mxu1 }
 0x237   : > { %v495_v40 = vpop.f32.mrf.mxu1 }
 0x238   : > { %v498_v41 = vsel %vm360_vm1, %v495_v40, -inf }
 0x239   : > { %499 = vmax.xlane.f32.xlu1 %v498_v41 }
 0x23b   : > { %v460_v43 = vpop.f32.mrf.mxu3 }
 0x23c   : > { %604 = vrot.lane.b32.xlu2 %v460_v43, %s1186_s30 }
 0x241   : > { %574 = vadd.xlane.f32.xlu1 %v573_v44 }
 0x2ac   : > { %v500_v46 = vpop.xlane.xlu1 %499 }
 0x2ad   : > { %v501_v47 = vsub.f32 %v495_v40, %v500_v46 }
 0x2af   : > { %v502_v48 = vmul.f32 1.442695, %v501_v47 }
 0x2b1   : > { %968 = vpow2.f32 %v502_v48 }
 0x2b4   : > { %v575_v49 = vpop.xlane.xlu1 %574 }
 0x2b5   : > { %970 = vrcp.f32 %v575_v49 }
 0x2b7   : > { %v969_v50 = vpop.eup %968 }
 0x2b8   : > { %v504_v51 = vsel %vm360_vm1, %v969_v50, 0.0 }
 0x2b9   : > { %505 = vadd.xlane.f32.xlu0 %v504_v51 }
 0x2bb   : > { %v971_v52 = vpop.eup %970 }
 0x2bc   : > { %v577_v53 = vmul.f32 %v971_v52, %v967_v42 }
 0x2be   : > { %861 = vmatmul.msk.f32.vlgmr.msrb.gmra.mxu2 %vm360_vm1, %v577_v53  ;;  %862 = vst.msk [vmem:[%s1369_s27 + $0x18] sm:$0xff] %vm360_vm1, %v577_v53 }
 0x32c   : > { %v506_v55 = vpop.xlane.xlu0 %505 }
 0x32d   : > { %972 = vrcp.f32 %v506_v55 }
 0x333   : > { %v973_v56 = vpop.eup %972 }
 0x334   : > { %v508_v57 = vmul.f32 %v973_v56, %v969_v50 }
 0x336   : > { %854 = vmatmul.msk.f32.vlgmr.msrb.gmra.mxu3 %vm360_vm1, %v508_v57  ;;  %855 = vst.msk [vmem:[%s1369_s27 + $0x10] sm:$0xff] %vm360_vm1, %v508_v57 }
 0x341   : > { %v598_v58 = vpop.f32.mrf.mxu2 }
 0x342   : > { %612 = vrot.lane.b32.xlu1 %v598_v58, %s1187_s6 }
 0x343   : > { %1091 = shalt.err (!%p1088_p13)
}
 0x344   : > { %s1188_s29 = smov 128   ;;  %s1189_s17 = smov 8   ;;  %v605_v60 = vpop.permute.xlu2 %604  ;;  %vm616_vm2 = vcmask 523264   ;;  %vm618_vm3 = vcmask 785408  }
 0x345   : > { %881 = dma.vmem_to_hbm [thread:$0]  (%p1271_p9), %s656_s7, 512, %s658_s10, %s627_s11, %s1188_s29, %s1188_s29, %s1189_s17   ;;  %v615_v61 = vsel %vm333_vm0, %v1378_v38, %v605_v60 }
 0x346   : > { %s1190_s20 = smov 64   ;;  %s837_s23 = sshll.u32 %s1322_s1, 3 }
 0x347   : > { %s865_s21 = sshll.u32 %s1174_s18, 3  ;;  %s321_s8 = scalar_lea.vmem [#allocation8], %s837_s23 }
 0x348   : > { %s638_s6 = scalar_lea.hbm %s1451_s3, %s865_s21  ;;  %s640_s24 = sshll.u32 %s321_s8, 4  ;;  %s641_s24 = int_to_ptr.vmem [resolvable:$true] %s640_s24 }
 0x349   : > { %s642_s26 = sshll.u32 %s638_s6, 4  ;;  %s622_s18 = scalar_lea.sflag [#allocation4], %s1322_s1  ;;  %s643_s26 = int_to_ptr.hbm [resolvable:$true] %s642_s26 }
 0x34a   : > { %s1106_s7 = sshra.s32 %s643_s26, 4  ;;  %s1112_s12 = scalar_lea.hbm %s1451_s3, 16  ;;  %s1107_s7 = int_to_ptr.hbm [resolvable:$true] %s1106_s7 }
 0x34b   : > { %s1108_s25 = scalar_lea.hbm %s1107_s7, 8  ;;  %p1113_p3 = scmp.lt.s32.totalorder %s1107_s7, %s1451_s3 }
 0x34c   : > { %p1109_p0 = scmp.ne.s32.totalorder %s1107_s7, %s1108_s25  ;;  %p1114_p4 = scmp.lt.s32.totalorder %s1112_s12, %s1108_s25 }
 0x34e   : > { %p1110_p1 = pnand %p1109_p0, %p1271_p9  ;;  %p1115_p5 = por %p1114_p4, %p1113_p3 }
 0x350   : > { %p1111_p2 = pneg %p1110_p1 }
 0x352   : > { %p1116_p6 = pnand %p1115_p5, %p1111_p2 }
 0x3b4   : > { %v613_v63 = vpop.permute.xlu1 %612 }
 0x3b9   : > { %v529_v59 = vpop.f32.mrf.mxu3 }
 0x3ba   : > { %608 = vrot.lane.b32.xlu0 %v529_v59, %s1190_s20 }
 0x42c   : > { %v609_v62 = vpop.permute.xlu0 %608 }
 0x42d   : > { %v617_v0 = vsel %vm616_vm2, %v615_v61, %v609_v62 }
 0x42e   : > { %v619_v1 = vsel %vm618_vm3, %v617_v0, %v613_v63 }
 0x42f   : > { %620 = vst [vmem:[%s321_s8] sm:$0xff] %v619_v1 }
 0x430   : > { %1119 = shalt.err (!%p1116_p6)
}
 0x431   : > { %880 = dma.vmem_to_hbm [thread:$0]  (%p1271_p9), %s641_s24, 128, %s643_s26, %s622_s18  }
 0x432 PF: > { %s1474_s13 = sld [smem:[#allocation17_spill]]  ;;  %s672_s22 = sand.u32 1, %s1162_s15  }
 0x433   : > { %p895_p7 = pnand %p823_p12, %p1278_p11  ;;  %s673_s19 = scalar_lea.sflag [#allocation4], %s672_s22 }
 0x435   : > { %p896_p8 = pneg %p895_p7 }
 0x437   : > { %1153 = dma.done.wait (%p896_p8), %s673_s19, 128  }
 0x438   : > { %1155 = vsyncadd (%p896_p8), %s673_s19, 4294967168  ;;  %s683_s5 = scalar_lea.sflag [#allocation10], %s672_s22 }
 0x439   : > { %1157 = dma.done.wait (%p896_p8), %s683_s5, 512  }
 0x43a   : > { %1159 = vsyncadd (%p896_p8), %s683_s5, 4294966784  ;;  %s27_s20 = sadd.s32 1, %s1474_s13   ;;  %s1475_s28 = sld [smem:[#allocation15_spill]] }
 0x43b   : > { %p24_p10 = scmp.ge.s32.totalorder %s27_s20, 4   ;;  %s1476_s17 = sld [smem:[#allocation19_spill]] }
 0x43c   : > { %s1477_s18 = sld [smem:[#allocation16_spill]]  ;;  %s1479_s15 = smov %s1166_s16 }
 0x43d   : > { %s1478_s19 = sld [smem:[#allocation18_spill]]  ;;  %26 = sbr.rel (!%p24_p10) target bundleno = 12 (0xc), region = 130 }
 0x440   : > { %s1480_s16 = smov %s1475_s28 }
 0x442   :  { %689 = vsyncpa [#allocation3], 1 }
 0x443   :  { %691 = vsyncpa [#allocation3 + $0x1], 1 }
 0x444   :  { %692 = vsyncpa [#allocation6], 1 }
 0x445   :  { %694 = vsyncpa [#allocation6 + $0x1], 1 }
 0x446   :  { %695 = vsyncpa [#allocation4], 1 }
 0x447   :  { %697 = vsyncpa [#allocation4 + $0x1], 1 }
 0x448   :  { %698 = vsyncpa [#allocation10], 1 }
 0x449   :  { %700 = vsyncpa [#allocation10 + $0x1], 1 }

</bundles_post_ra>
